<compile_context>
chip_gen: v7x
topology: tpu7x:2x2x1
jax: 0.10.0
libtpu: 0.0.40
codegen_flags: <defaults>
</compile_context>

<pallas_src>
import jax
import jax.numpy as jnp
from jax import lax
from jax.experimental import pallas as pl
from jax.experimental.pallas import tpu as pltpu

_SUB_B = 256  # in-kernel row sub-block: bounds live vregs (v5e spill mitigation)


def _mlp_kernel(x_ref, w1_ref, b1_ref, w2_ref, b2_ref, w3_ref, b3_ref, o_ref):
    # x: (tile_b, 2) f32; w1: (2, H) f32; b1/b2 f32; w2 (H,H), w3 (H,2) f32 or bf16; b3 (1,2) f32.
    tile_b = x_ref.shape[0]
    sub = min(_SUB_B, tile_b)
    n_full = tile_b // sub
    rem = tile_b - n_full * sub

    # Hoist the VMEM-resident operands out of the sub-block loop (avoid re-loads / re-broadcasts).
    w1_r0 = w1_ref[0:1, :]
    w1_r1 = w1_ref[1:2, :]
    b1 = b1_ref[...]
    w2 = w2_ref[...]
    b2 = b2_ref[...]
    w3 = w3_ref[...]
    b3 = b3_ref[...]

    def block(s0, sz):
        x = x_ref[pl.ds(s0, sz), :]
        # fc1 + ReLU: K=2 contraction as two VPU broadcast-FMAs (skip the MXU).
        h = x[:, 0:1] * w1_r0 + x[:, 1:2] * w1_r1 + b1
        h = jnp.maximum(h, 0.0)                                   # f32 elementwise (v5e-safe)
        # fc2 + ReLU: MXU dot (bf16 operands when enabled), f32 accumulation.
        h2 = jnp.dot(h.astype(w2.dtype), w2, preferred_element_type=jnp.float32)
        h2 = jnp.maximum(h2 + b2, 0.0)
        # fc3: (sz, H) @ (H, 2); MXU pads N internally, output store is (sz, 2).
        out = jnp.dot(h2.astype(w3.dtype), w3, preferred_element_type=jnp.float32)
        o_ref[pl.ds(s0, sz), :] = (out + b3).astype(o_ref.dtype)

    if n_full == 1 and rem == 0:
        block(0, tile_b)
    else:
        def body(i, carry):
            block(i * sub, sub)
            return carry
        lax.fori_loop(0, n_full, body, 0, unroll=True)
        if rem:
            block(n_full * sub, rem)


def _round_up(n, m):
    return (n + m - 1) // m * m


def _cdiv(a, b):
    return -(-a // b)


def _choose_tiling(batch, tile_b_max):
    """Adaptive batch tiling: tile_b multiple of 8, >=2 grid steps (v7x megacore),
    batch padding bounded to < 8 extra rows per tile."""
    b8 = _round_up(batch, 8)
    num_tiles = max(2, _cdiv(b8, tile_b_max)) if b8 >= 16 else 1
    tile_b = _round_up(_cdiv(b8, num_tiles), 8)
    b_pad = num_tiles * tile_b
    return tile_b, b_pad, num_tiles


def basic_network_forward(x, params, *, tile_b_max=1024, use_bf16=True, min_pallas_batch=64):
    """x: (B, 2) float32. params: w_i as (in, out), b_i as (1, out), all float32."""
    w1, b1 = params["w1"], params["b1"]
    w2, b2 = params["w2"], params["b2"]
    w3, b3 = params["w3"], params["b3"]

    B, in_dim = x.shape
    H = w1.shape[1]
    out_dim = w3.shape[1]

    # Tiny batches: fixed pallas_call + DMA-priming overhead dwarfs the work -> plain XLA.
    if B < min_pallas_batch:
        h = jnp.maximum(x @ w1 + b1, 0.0)
        if use_bf16:
            h = jnp.dot(h.astype(jnp.bfloat16), w2.astype(jnp.bfloat16),
                        preferred_element_type=jnp.float32) + b2
            h = jnp.maximum(h, 0.0)
            return jnp.dot(h.astype(jnp.bfloat16), w3.astype(jnp.bfloat16),
                           preferred_element_type=jnp.float32) + b3
        h = jnp.maximum(h @ w2 + b2, 0.0)
        return h @ w3 + b3

    # Narrow the MXU operands only; fc1 weights, biases and elementwise math stay f32.
    if use_bf16:
        w2m = w2.astype(jnp.bfloat16)
        w3m = w3.astype(jnp.bfloat16)
    else:
        w2m, w3m = w2, w3

    tile_b, b_pad, num_tiles = _choose_tiling(B, tile_b_max)
    if b_pad != B:
        x = jnp.pad(x, ((0, b_pad - B), (0, 0)))

    const = lambda a: pl.BlockSpec(a.shape, lambda i: (0,) * a.ndim)  # VMEM-resident operand

    flops = 2 * b_pad * (in_dim * H + H * H + H * out_dim)
    bytes_accessed = (
        x.size * x.dtype.itemsize
        + sum(int(a.size) * a.dtype.itemsize for a in (w1, b1, w2m, b2, w3m, b3))
        + b_pad * out_dim * 4
    )

    out = pl.pallas_call(
        _mlp_kernel,
        out_shape=jax.ShapeDtypeStruct((b_pad, out_dim), jnp.float32),
        grid=(num_tiles,),
        in_specs=[
            pl.BlockSpec((tile_b, in_dim), lambda i: (i, 0)),   # streamed batch tile
            const(w1), const(b1), const(w2m), const(b2), const(w3m), const(b3),
        ],
        out_specs=pl.BlockSpec((tile_b, out_dim), lambda i: (i, 0)),
        compiler_params=pltpu.CompilerParams(
            dimension_semantics=("parallel",),   # shard batch tiles across TCs on v7x
        ),
        cost_estimate=pl.CostEstimate(
            flops=flops, transcendentals=0, bytes_accessed=bytes_accessed),
    )(x, w1, b1, w2m, b2, w3m, b3)

    return out[:B] if b_pad != B else out


def init_params(key, hidden_size=128, in_dim=2, out_dim=2, dtype=jnp.float32):
    """Deterministic init mimicking nn.Linear's uniform(-1/sqrt(fan_in), 1/sqrt(fan_in))."""
    ks = jax.random.split(key, 6)

    def lin(kw, kb, fan_in, fan_out):
        bound = 1.0 / jnp.sqrt(fan_in)
        w = jax.random.uniform(kw, (fan_in, fan_out), dtype, -bound, bound)
        b = jax.random.uniform(kb, (1, fan_out), dtype, -bound, bound)
        return w, b

    w1, b1 = lin(ks[0], ks[1], in_dim, hidden_size)
    w2, b2 = lin(ks[2], ks[3], hidden_size, hidden_size)
    w3, b3 = lin(ks[4], ks[5], hidden_size, out_dim)
    return {"w1": w1, "b1": b1, "w2": w2, "b2": b2, "w3": w3, "b3": b3}


def _reference_f32(x, p):
    h = jnp.maximum(x @ p["w1"] + p["b1"], 0.0)
    h = jnp.maximum(h @ p["w2"] + p["b2"], 0.0)
    return h @ p["w3"] + p["b3"]


def _reference_bf16(x, p):
    # Mimics the kernel's mixed precision: f32 fc1/bias/ReLU, bf16 MXU inputs for
    # fc2/fc3 with f32 accumulation.
    h = jnp.maximum(x @ p["w1"] + p["b1"], 0.0)
    h = jnp.dot(h.astype(jnp.bfloat16), p["w2"].astype(jnp.bfloat16),
                preferred_element_type=jnp.float32) + p["b2"]
    h = jnp.maximum(h, 0.0)
    return jnp.dot(h.astype(jnp.bfloat16), p["w3"].astype(jnp.bfloat16),
                   preferred_element_type=jnp.float32) + p["b3"]


if __name__ == "__main__":
    key = jax.random.PRNGKey(0)
    k_x, k_p = jax.random.split(key)

    hidden = 128  # module default
    params = init_params(k_p, hidden_size=hidden)

    # B=8    -> XLA fallback path (below min_pallas_batch)
    # B=256  -> Pallas: 2 grid steps of 128 rows, single in-kernel block
    # B=1030 -> Pallas: padded to 1040, 2 steps of 520 rows, in-kernel fori_loop over
    #           2x256-row sub-blocks + 8-row remainder block, batch-pad slice on return
    for B in (8, 256, 1030):
        x = jax.random.normal(jax.random.fold_in(k_x, B), (B, 2), dtype=jnp.float32)

        # Exact-precision path: matches the PyTorch f32 forward.
        out_f32 = jax.block_until_ready(basic_network_forward(x, params, use_bf16=False))
        ref_f32 = _reference_f32(x, params)
        assert out_f32.shape == (B, 2), out_f32.shape
        assert jnp.allclose(out_f32, ref_f32, atol=1e-4, rtol=1e-4), f"f32 mismatch (B={B})"

        # Performance path: bf16 MXU operands, f32 accumulation.
        out_bf16 = jax.block_until_ready(basic_network_forward(x, params, use_bf16=True))
        ref_bf16 = _reference_bf16(x, params)
        assert jnp.allclose(out_bf16, ref_bf16, atol=2e-3, rtol=2e-3), f"bf16 mismatch (B={B})"

    print("KERNEL_OK")
</pallas_src>

<mosaic_0001>
module attributes {stable_mosaic.version = 11 : i64} {
  func.func @_mlp_kernel(%arg0: i32, %arg1: memref<128x2xf32, #tpu.memory_space<vmem>>, %arg2: memref<2x128xf32, #tpu.memory_space<vmem>>, %arg3: memref<1x128xf32, #tpu.memory_space<vmem>>, %arg4: memref<128x128xf32, #tpu.memory_space<vmem>>, %arg5: memref<1x128xf32, #tpu.memory_space<vmem>>, %arg6: memref<128x2xf32, #tpu.memory_space<vmem>>, %arg7: memref<1x2xf32, #tpu.memory_space<vmem>>, %arg8: memref<128x2xf32, #tpu.memory_space<vmem>>) attributes {dimension_semantics = [#tpu.dimension_semantics<parallel>], iteration_bounds = array<i64: 2>, scalar_prefetch = 0 : i64, scratch_operands = 0 : i64, tpu.core_type = #tpu.core_type<tc>, window_params = [{transform_indices = @transform_0, window_bounds = array<i64: 128, 2>}, {pipeline_mode = #tpu.pipeline_mode<synchronous>, transform_indices = @transform_1, window_bounds = array<i64: 2, 128>}, {pipeline_mode = #tpu.pipeline_mode<synchronous>, transform_indices = @transform_2, window_bounds = array<i64: 1, 128>}, {pipeline_mode = #tpu.pipeline_mode<synchronous>, transform_indices = @transform_3, window_bounds = array<i64: 128, 128>}, {pipeline_mode = #tpu.pipeline_mode<synchronous>, transform_indices = @transform_4, window_bounds = array<i64: 1, 128>}, {pipeline_mode = #tpu.pipeline_mode<synchronous>, transform_indices = @transform_5, window_bounds = array<i64: 128, 2>}, {pipeline_mode = #tpu.pipeline_mode<synchronous>, transform_indices = @transform_6, window_bounds = array<i64: 1, 2>}, {transform_indices = @transform_7, window_bounds = array<i64: 128, 2>}]} {
    %c0 = arith.constant 0 : index
    %c0_0 = arith.constant 0 : index
    %0 = vector.load %arg2[%c0, %c0_0] : memref<2x128xf32, #tpu.memory_space<vmem>>, vector<1x128xf32>
    %c1 = arith.constant 1 : index
    %c0_1 = arith.constant 0 : index
    %1 = vector.load %arg2[%c1, %c0_1] : memref<2x128xf32, #tpu.memory_space<vmem>>, vector<1x128xf32>
    %c0_2 = arith.constant 0 : index
    %c0_3 = arith.constant 0 : index
    %2 = vector.load %arg3[%c0_2, %c0_3] : memref<1x128xf32, #tpu.memory_space<vmem>>, vector<1x128xf32>
    %c0_4 = arith.constant 0 : index
    %c0_5 = arith.constant 0 : index
    %3 = vector.load %arg4[%c0_4, %c0_5] : memref<128x128xf32, #tpu.memory_space<vmem>>, vector<128x128xf32>
    %c0_6 = arith.constant 0 : index
    %c0_7 = arith.constant 0 : index
    %4 = vector.load %arg5[%c0_6, %c0_7] : memref<1x128xf32, #tpu.memory_space<vmem>>, vector<1x128xf32>
    %c0_8 = arith.constant 0 : index
    %c0_9 = arith.constant 0 : index
    %5 = vector.load %arg6[%c0_8, %c0_9] : memref<128x2xf32, #tpu.memory_space<vmem>>, vector<128x2xf32>
    %c0_10 = arith.constant 0 : index
    %c0_11 = arith.constant 0 : index
    %6 = vector.load %arg7[%c0_10, %c0_11] : memref<1x2xf32, #tpu.memory_space<vmem>>, vector<1x2xf32>
    %c0_12 = arith.constant 0 : index
    %c0_13 = arith.constant 0 : index
    %7 = vector.load %arg1[%c0_12, %c0_13] : memref<128x2xf32, #tpu.memory_space<vmem>>, vector<128x2xf32>
    %8 = vector.extract_strided_slice %7 {offsets = [0, 0], sizes = [128, 1], strides = [1, 1]} : vector<128x2xf32> to vector<128x1xf32>
    %9 = vector.broadcast %8 : vector<128x1xf32> to vector<128x128xf32>
    %10 = vector.broadcast %0 : vector<1x128xf32> to vector<128x128xf32>
    %11 = arith.mulf %9, %10 : vector<128x128xf32>
    %12 = vector.extract_strided_slice %7 {offsets = [0, 1], sizes = [128, 1], strides = [1, 1]} : vector<128x2xf32> to vector<128x1xf32>
    %13 = vector.broadcast %12 : vector<128x1xf32> to vector<128x128xf32>
    %14 = vector.broadcast %1 : vector<1x128xf32> to vector<128x128xf32>
    %15 = arith.mulf %13, %14 : vector<128x128xf32>
    %16 = arith.addf %11, %15 : vector<128x128xf32>
    %17 = vector.broadcast %2 : vector<1x128xf32> to vector<128x128xf32>
    %18 = arith.addf %16, %17 : vector<128x128xf32>
    %cst = arith.constant 0.000000e+00 : f32
    %19 = vector.broadcast %cst : f32 to vector<128x128xf32>
    %20 = arith.maximumf %18, %19 : vector<128x128xf32>
    %cst_14 = arith.constant dense<0.000000e+00> : vector<128x128xf32>
    %21 = tpu.matmul %20, %3, %cst_14 {dimension_numbers = #tpu.dot_dimension_numbers<[1], [0], [0], [1], [0, 0, 1, 1], [], []>} : vector<128x128xf32>, vector<128x128xf32>, vector<128x128xf32> -> vector<128x128xf32>
    %22 = vector.broadcast %4 : vector<1x128xf32> to vector<128x128xf32>
    %23 = arith.addf %21, %22 : vector<128x128xf32>
    %cst_15 = arith.constant 0.000000e+00 : f32
    %24 = vector.broadcast %cst_15 : f32 to vector<128x128xf32>
    %25 = arith.maximumf %23, %24 : vector<128x128xf32>
    %cst_16 = arith.constant dense<0.000000e+00> : vector<128x2xf32>
    %26 = tpu.matmul %25, %5, %cst_16 {dimension_numbers = #tpu.dot_dimension_numbers<[1], [0], [0], [1], [0, 0, 1, 1], [], []>} : vector<128x128xf32>, vector<128x2xf32>, vector<128x2xf32> -> vector<128x2xf32>
    %27 = vector.broadcast %6 : vector<1x2xf32> to vector<128x2xf32>
    %28 = arith.addf %26, %27 : vector<128x2xf32>
    %c0_17 = arith.constant 0 : index
    %c0_18 = arith.constant 0 : index
    %29 = vector.load %arg8[%c0_17, %c0_18] : memref<128x2xf32, #tpu.memory_space<vmem>>, vector<128x2xf32>
    tpu.vector_store %arg8[%c0_17, %c0_18], %28 {strides = array<i32>} : memref<128x2xf32, #tpu.memory_space<vmem>>, vector<128x2xf32>,
    return
  }
  func.func @transform_0(%arg0: i32) -> (i32, i32) {
    %c0_i32 = arith.constant 0 : i32
    %c0_i32_0 = arith.constant 0 : i32
    return %arg0, %c0_i32 : i32, i32
  }
  func.func @transform_1(%arg0: i32) -> (i32, i32) {
    %c0_i32 = arith.constant 0 : i32
    %c0_i32_0 = arith.constant 0 : i32
    %c0_i32_1 = arith.constant 0 : i32
    return %c0_i32, %c0_i32_0 : i32, i32
  }
  func.func @transform_2(%arg0: i32) -> (i32, i32) {
    %c0_i32 = arith.constant 0 : i32
    %c0_i32_0 = arith.constant 0 : i32
    %c0_i32_1 = arith.constant 0 : i32
    return %c0_i32, %c0_i32_0 : i32, i32
  }
  func.func @transform_3(%arg0: i32) -> (i32, i32) {
    %c0_i32 = arith.constant 0 : i32
    %c0_i32_0 = arith.constant 0 : i32
    %c0_i32_1 = arith.constant 0 : i32
    return %c0_i32, %c0_i32_0 : i32, i32
  }
  func.func @transform_4(%arg0: i32) -> (i32, i32) {
    %c0_i32 = arith.constant 0 : i32
    %c0_i32_0 = arith.constant 0 : i32
    %c0_i32_1 = arith.constant 0 : i32
    return %c0_i32, %c0_i32_0 : i32, i32
  }
  func.func @transform_5(%arg0: i32) -> (i32, i32) {
    %c0_i32 = arith.constant 0 : i32
    %c0_i32_0 = arith.constant 0 : i32
    %c0_i32_1 = arith.constant 0 : i32
    return %c0_i32, %c0_i32_0 : i32, i32
  }
  func.func @transform_6(%arg0: i32) -> (i32, i32) {
    %c0_i32 = arith.constant 0 : i32
    %c0_i32_0 = arith.constant 0 : i32
    %c0_i32_1 = arith.constant 0 : i32
    return %c0_i32, %c0_i32_0 : i32, i32
  }
  func.func @transform_7(%arg0: i32) -> (i32, i32) {
    %c0_i32 = arith.constant 0 : i32
    %c0_i32_0 = arith.constant 0 : i32
    return %arg0, %c0_i32 : i32, i32
  }
}

</mosaic_0001>

<bundles_post_ra>
// kernel: tpu_custom_call.1
= control target key start
LH: loop header
LB: loop body
LE: loop exit
PB: predicated region body
PF: predicated region fallthrough
CT: control target
= control target key end

     0   :  { %s1285_s24 = smov 0   ;;  %s1526_s0 = inlined_call_operand.vmem [shape: f32[256,2], index: 0, kind: input, shape index: {}]   ;;  %s1527_s1 = inlined_call_operand.vmem [shape: f32[2,128], index: 1, kind: input, shape index: {}]   ;;  %s1528_s2 = inlined_call_operand.vmem [shape: f32[1,128], index: 2, kind: input, shape index: {}]   ;;  %s1529_s3 = inlined_call_operand.vmem [shape: f32[128,128], index: 3, kind: input, shape index: {}]   ;;  %s1530_s4 = inlined_call_operand.vmem [shape: f32[1,128], index: 4, kind: input, shape index: {}]   ;;  %s1531_s5 = inlined_call_operand.vmem [shape: f32[128,2], index: 5, kind: input, shape index: {}]   ;;  %s1532_s6 = inlined_call_operand.vmem [shape: f32[1,2], index: 6, kind: input, shape index: {}]   ;;  %s1533_s7 = inlined_call_operand.vmem [shape: f32[256,2], index: 7, kind: output, shape index: {}]  }
   0x1 LB: > { %s964_s25 = sadd.s32 4294967295, %s1241_s24   ;;  %p968_p0 = scmp.ge.s32.totalorder %s1241_s24, 1  ;;  %s1241_s24 = sphi %s1285_s24, %s17_s24  }
   0x2   : > { %p238_p1 = scmp.lt.s32.totalorder %s1241_s24, 3 }
   0x4   : > { %p239_p2 = pnand %p968_p0, %p238_p1 }
   0x5   : > { %s969_s26 = sshll.u32 (!%p239_p2), %s964_s25, 4  ;;  %v285_v0 = vld [vmem:[%s1529_s3] sm:$0xff] (!%p239_p2)  ;;  %v286_v1 = vld [vmem:[%s1529_s3 + $0x8] sm:$0xff] (!%p239_p2)  ;;  %v287_v2 = vld [vmem:[%s1529_s3 + $0x10] sm:$0xff] (!%p239_p2)  ;;  %v1243_v3 = vmov (!%p239_p2), 0   ;;  %v1244_v15 = vmov (!%p239_p2), 1  }
   0x6   : > { %242 = sbr.rel (%p239_p2) target bundleno = 649 (0x289), region = 48  ;;  %1232 = vset.pattern.permute.xlu1 (!%p239_p2), %v1243_v3  ;;  %1230 = vset.pattern.permute.xlu0 (!%p239_p2), %v1243_v3  ;;  %p271_p3 = scmp.lt.s32.totalorder (!%p239_p2), %s969_s26, 31  ;;  %v1156_v4 = vpack.c.bf16 (!%p239_p2), %v286_v1, %v285_v0  ;;  %v288_v5 = vld [vmem:[%s1529_s3 + $0x18] sm:$0xff] (!%p239_p2)  ;;  %v289_v7 = vld [vmem:[%s1529_s3 + $0x20] sm:$0xff] (!%p239_p2)  ;;  %v290_v8 = vld [vmem:[%s1529_s3 + $0x28] sm:$0xff] (!%p239_p2)  ;;  %vm891_vm0 = vcmask (!%p239_p2), 15360  }
   0x7   : > { %v1160_v6 = vpack.c.bf16 (!%p239_p2), %v288_v5, %v287_v2  ;;  %v1164_v9 = vpack.c.bf16 (!%p239_p2), %v290_v8, %v289_v7  ;;  %v291_v12 = vld [vmem:[%s1529_s3 + $0x30] sm:$0xff] (!%p239_p2)  ;;  %v292_v13 = vld [vmem:[%s1529_s3 + $0x38] sm:$0xff] (!%p239_p2)  ;;  %v293_v16 = vld [vmem:[%s1529_s3 + $0x40] sm:$0xff] (!%p239_p2) }
   0x8   : > { %1157 = vmatprep.subr.bf16.mxu0 (!%p239_p2), %v1156_v4  ;;  %v1168_v14 = vpack.c.bf16 (!%p239_p2), %v292_v13, %v291_v12  ;;  %v294_v17 = vld [vmem:[%s1529_s3 + $0x48] sm:$0xff] (!%p239_p2)  ;;  %v295_v20 = vld [vmem:[%s1529_s3 + $0x50] sm:$0xff] (!%p239_p2)  ;;  %v296_v21 = vld [vmem:[%s1529_s3 + $0x58] sm:$0xff] (!%p239_p2) }
   0x9   : > { %1159 = vmatpush3.bf16.msra.mxu0 (!%p239_p2), %v1156_v4  ;;  %v1172_v19 = vpack.c.bf16 (!%p239_p2), %v294_v17, %v293_v16  ;;  %v1176_v23 = vpack.c.bf16 (!%p239_p2), %v296_v21, %v295_v20  ;;  %v297_v24 = vld [vmem:[%s1529_s3 + $0x60] sm:$0xff] (!%p239_p2)  ;;  %v298_v25 = vld [vmem:[%s1529_s3 + $0x68] sm:$0xff] (!%p239_p2)  ;;  %v299_v28 = vld [vmem:[%s1529_s3 + $0x70] sm:$0xff] (!%p239_p2) }
   0xa   : > { %1161 = vmatprep.subr.bf16.mxu0 (!%p239_p2), %v1160_v6  ;;  %v1180_v27 = vpack.c.bf16 (!%p239_p2), %v298_v25, %v297_v24  ;;  %v300_v29 = vld [vmem:[%s1529_s3 + $0x78] sm:$0xff] (!%p239_p2)  ;;  %v302_v42 = vld [vmem:[%s1531_s5] sm:$0xff] (!%p239_p2)  ;;  %v303_v43 = vld [vmem:[%s1531_s5 + $0x8] sm:$0xff] (!%p239_p2) }
   0xb   : > { %v1184_v31 = vpack.c.bf16 (!%p239_p2), %v300_v29, %v299_v28  ;;  %v304_v44 = vld [vmem:[%s1531_s5 + $0x10] sm:$0xff] (!%p239_p2)  ;;  %v1188_v45 = vpack.c.bf16 (!%p239_p2), %v303_v43, %v302_v42  ;;  %v305_v46 = vld [vmem:[%s1531_s5 + $0x18] sm:$0xff] (!%p239_p2)  ;;  %v306_v48 = vld [vmem:[%s1531_s5 + $0x20] sm:$0xff] (!%p239_p2) }
   0xc   : > { %v1192_v47 = vpack.c.bf16 (!%p239_p2), %v305_v46, %v304_v44  ;;  %v307_v49 = vld [vmem:[%s1531_s5 + $0x28] sm:$0xff] (!%p239_p2)  ;;  %v308_v51 = vld [vmem:[%s1531_s5 + $0x30] sm:$0xff] (!%p239_p2)  ;;  %v309_v52 = vld [vmem:[%s1531_s5 + $0x38] sm:$0xff] (!%p239_p2) }
   0xd   : > { %s1535_s26 = smov (!%p271_p3, %s969_s26), 31  ;;  %1163 = vmatpush3.bf16.msra.mxu0 %v1160_v6  ;;  %1189 = vmatprep.subr.bf16.mxu1 %v1188_v45  ;;  %v1196_v50 = vpack.c.bf16 %v307_v49, %v306_v48  ;;  %v1200_v53 = vpack.c.bf16 %v309_v52, %v308_v51  ;;  %v310_v54 = vld [vmem:[%s1531_s5 + $0x40] sm:$0xff]  ;;  %v311_v55 = vld [vmem:[%s1531_s5 + $0x48] sm:$0xff]  ;;  %v312_v57 = vld [vmem:[%s1531_s5 + $0x50] sm:$0xff] }
   0xe   : > { %s970_s16 = sshll.u32 %s1535_s26, 3  ;;  %1165 = vmatprep.subr.bf16.mxu0 %v1164_v9  ;;  %1191 = vmatpush3.bf16.msra.mxu1 %v1188_v45  ;;  %v1204_v56 = vpack.c.bf16 %v311_v55, %v310_v54  ;;  %v313_v58 = vld [vmem:[%s1531_s5 + $0x58] sm:$0xff]  ;;  %v314_v60 = vld [vmem:[%s1531_s5 + $0x60] sm:$0xff]  ;;  %v315_v61 = vld [vmem:[%s1531_s5 + $0x68] sm:$0xff] }
   0xf   : > { %s1319_s19 = scalar_lea.vmem %s1526_s0, %s970_s16  ;;  %1193 = vmatprep.subr.bf16.mxu1 %v1192_v47  ;;  %v1208_v59 = vpack.c.bf16 %v313_v58, %v312_v57  ;;  %v1212_v62 = vpack.c.bf16 %v315_v61, %v314_v60  ;;  %v1412_v1 = vld [vmem:[%s1527_s1] ss:$0 sm:$0xff]  ;;  %v1417_v2 = vld [vmem:[%s1527_s1 + $0x1] ss:$0 sm:$0xff]  ;;  %s1489_s27 = scalar_lea.vmem %s1533_s7, %s970_s16 }
  0x10   : > { %v320_v10 = vld [vmem:[%s1319_s19 + $0x8] sm:$0xff]  ;;  %v319_v11 = vld [vmem:[%s1319_s19] sm:$0xff]  ;;  %v321_v18 = vld [vmem:[%s1319_s19 + $0x10] sm:$0xff] }
  0x11   : > { %342 = vperm.xlu1 %1232, %v320_v10   ;;  %337 = vperm.xlu0 %1230, %v319_v11   ;;  %v322_v22 = vld [vmem:[%s1319_s19 + $0x18] sm:$0xff]  ;;  %v323_v26 = vld [vmem:[%s1319_s19 + $0x20] sm:$0xff]  ;;  %v324_v30 = vld [vmem:[%s1319_s19 + $0x28] sm:$0xff] }
  0x12   : > { %1167 = vmatpush3.bf16.msra.mxu0 %v1164_v9  ;;  %v325_v32 = vld [vmem:[%s1319_s19 + $0x30] sm:$0xff]  ;;  %v326_v33 = vld [vmem:[%s1319_s19 + $0x38] sm:$0xff]  ;;  %v327_v34 = vld [vmem:[%s1319_s19 + $0x40] sm:$0xff]  ;;  %1195 = vmatpush3.bf16.msra.mxu1 %v1192_v47 }
  0x13   : > { %1169 = vmatprep.subr.bf16.mxu0 %v1168_v14  ;;  %v328_v35 = vld [vmem:[%s1319_s19 + $0x48] sm:$0xff]  ;;  %v329_v36 = vld [vmem:[%s1319_s19 + $0x50] sm:$0xff]  ;;  %v330_v37 = vld [vmem:[%s1319_s19 + $0x58] sm:$0xff]  ;;  %1197 = vmatprep.subr.bf16.mxu1 %v1196_v50 }
  0x14   : > { %v331_v38 = vld [vmem:[%s1319_s19 + $0x60] sm:$0xff]  ;;  %v332_v39 = vld [vmem:[%s1319_s19 + $0x68] sm:$0xff]  ;;  %v333_v40 = vld [vmem:[%s1319_s19 + $0x70] sm:$0xff] }
  0x15   : > { %1233 = vset.pattern.permute.xlu1 %v1244_v15  ;;  %1231 = vset.pattern.permute.xlu0 %v1244_v15  ;;  %v334_v41 = vld [vmem:[%s1319_s19 + $0x78] sm:$0xff]  ;;  %v1426_v9 = vld [vmem:[%s1528_s2] ss:$0 sm:$0xff] }
  0x16   : > { %440 = vperm.xlu1 %1233, %v320_v10   ;;  %436 = vperm.xlu0 %1231, %v319_v11  }
  0x17   : > { %1171 = vmatpush3.bf16.msra.mxu0 %v1168_v14  ;;  %1199 = vmatpush3.bf16.msra.mxu1 %v1196_v50 }
  0x18   : > { %1173 = vmatprep.subr.bf16.mxu0 %v1172_v19  ;;  %1201 = vmatprep.subr.bf16.mxu1 %v1200_v53 }
  0x1a   : > { %1234 = vset.pattern.permute.xlu1 %v1243_v3  ;;  %444 = vperm.xlu0 %1231, %v321_v18  }
  0x1b   : > { %347 = vperm.xlu1 %1234, %v321_v18   ;;  %1175 = vmatpush3.bf16.msra.mxu0 %v1172_v19 }
  0x1c   : > { %1177 = vmatprep.subr.bf16.mxu0 %v1176_v23  ;;  %1203 = vmatpush3.bf16.msra.mxu1 %v1200_v53 }
  0x1d   : > { %1205 = vmatprep.subr.bf16.mxu1 %v1204_v56 }
  0x1e   : > { %448 = vperm.xlu0 %1231, %v322_v22  }
  0x1f   : > { %352 = vperm.xlu1 %1234, %v322_v22   ;;  %1179 = vmatpush3.bf16.msra.mxu0 %v1176_v23 }
  0x20   : > { %1181 = vmatprep.subr.bf16.mxu0 %v1180_v27  ;;  %1207 = vmatpush3.bf16.msra.mxu1 %v1204_v56 }
  0x21   : > { %1209 = vmatprep.subr.bf16.mxu1 %v1208_v59 }
  0x22   : > { %452 = vperm.xlu0 %1231, %v323_v26  }
  0x23   : > { %357 = vperm.xlu1 %1234, %v323_v26   ;;  %1183 = vmatpush3.bf16.msra.mxu0 %v1180_v27 }
  0x24   : > { %1185 = vmatprep.subr.bf16.mxu0 %v1184_v31  ;;  %1211 = vmatpush3.bf16.msra.mxu1 %v1208_v59 }
  0x25   : > { %1213 = vmatprep.subr.bf16.mxu1 %v1212_v62 }
  0x26   : > { %456 = vperm.xlu0 %1231, %v324_v30  }
  0x27   : > { %362 = vperm.xlu1 %1234, %v324_v30   ;;  %1187 = vmatpush3.bf16.msra.mxu0 %v1184_v31 }
  0x28   : > { %1215 = vmatpush3.bf16.msra.mxu1 %v1212_v62 }
  0x2a   : > { %460 = vperm.xlu0 %1231, %v325_v32  }
  0x2b   : > { %367 = vperm.xlu1 %1234, %v325_v32  }
  0x2e   : > { %464 = vperm.xlu0 %1231, %v326_v33  }
  0x2f   : > { %372 = vperm.xlu1 %1234, %v326_v33  }
  0x32   : > { %468 = vperm.xlu0 %1231, %v327_v34  }
  0x33   : > { %377 = vperm.xlu1 %1234, %v327_v34  }
  0x36   : > { %472 = vperm.xlu0 %1231, %v328_v35  }
  0x37   : > { %382 = vperm.xlu1 %1234, %v328_v35  }
  0x3a   : > { %476 = vperm.xlu0 %1231, %v329_v36  }
  0x3b   : > { %387 = vperm.xlu1 %1234, %v329_v36  }
  0x3e   : > { %480 = vperm.xlu0 %1231, %v330_v37  }
  0x3f   : > { %392 = vperm.xlu1 %1234, %v330_v37  }
  0x42   : > { %484 = vperm.xlu0 %1231, %v331_v38  }
  0x43   : > { %397 = vperm.xlu1 %1234, %v331_v38  }
  0x46   : > { %488 = vperm.xlu0 %1231, %v332_v39  }
  0x47   : > { %402 = vperm.xlu1 %1234, %v332_v39  }
  0x4a   : > { %492 = vperm.xlu0 %1231, %v333_v40  }
  0x4b   : > { %407 = vperm.xlu1 %1234, %v333_v40  }
  0x4e   : > { %496 = vperm.xlu0 %1231, %v334_v41  }
  0x4f   : > { %412 = vperm.xlu1 %1234, %v334_v41  }
  0x90   : > { %v343_v63 = vpop.permute.xlu1 %342  ;;  %v338_v0 = vpop.permute.xlu0 %337 }
  0x91   : > { %v420_v5 = vmul.f32 %v1412_v1, %v343_v63  ;;  %v419_v6 = vmul.f32 %v1412_v1, %v338_v0 }
  0x95   : > { %v441_v3 = vpop.permute.xlu1 %440  ;;  %v437_v4 = vpop.permute.xlu0 %436 }
  0x96   : > { %v504_v7 = vmul.f32 %v1417_v2, %v441_v3  ;;  %v503_v8 = vmul.f32 %v1417_v2, %v437_v4 }
  0x98   : > { %v520_v10 = vadd.f32 %v504_v7, %v420_v5  ;;  %v519_v11 = vadd.f32 %v503_v8, %v419_v6 }
  0x99   : > { %v445_v12 = vpop.permute.xlu0 %444 }
  0x9a   : > { %v505_v13 = vmul.f32 %v1417_v2, %v445_v12  ;;  %v348_v14 = vpop.permute.xlu1 %347  ;;  %v541_v15 = vadd.f32 %v1426_v9, %v519_v11  ;;  %v542_v16 = vadd.f32 %v1426_v9, %v520_v10 }
  0x9b   : > { %v421_v17 = vmul.f32 %v1412_v1, %v348_v14 }
  0x9c   : > { %v557_v18 = vmax.f32 %v541_v15, 0.0  ;;  %v558_v19 = vmax.f32 %v542_v16, 0.0 }
  0x9d   : > { %v521_v20 = vadd.f32 %v505_v13, %v421_v17  ;;  %v449_v21 = vpop.permute.xlu0 %448 }
  0x9e   : > { %v506_v22 = vmul.f32 %v1417_v2, %v449_v21  ;;  %v353_v23 = vpop.permute.xlu1 %352  ;;  %1076 = vmatprep.mubr.f32.mxu0 %v557_v18 }
  0x9f   : > { %v422_v24 = vmul.f32 %v1412_v1, %v353_v23  ;;  %1077 = vmatmul.mubr.f32.vlgmr.msra.gmra.mrb[0].mxu0 %v558_v19  ;;  %v543_v25 = vadd.f32 %v1426_v9, %v521_v20 }
  0xa1   : > { %v522_v26 = vadd.f32 %v506_v22, %v422_v24  ;;  %v453_v27 = vpop.permute.xlu0 %452  ;;  %v559_v28 = vmax.f32 %v543_v25, 0.0 }
  0xa2   : > { %v507_v29 = vmul.f32 %v1417_v2, %v453_v27  ;;  %v358_v30 = vpop.permute.xlu1 %357 }
  0xa3   : > { %v423_v31 = vmul.f32 %v1412_v1, %v358_v30  ;;  %1079 = vmatprep.mubr.f32.mxu0 %v559_v28  ;;  %v544_v32 = vadd.f32 %v1426_v9, %v522_v26 }
  0xa5   : > { %v523_v33 = vadd.f32 %v507_v29, %v423_v31  ;;  %v457_v34 = vpop.permute.xlu0 %456  ;;  %v560_v35 = vmax.f32 %v544_v32, 0.0 }
  0xa6   : > { %v508_v36 = vmul.f32 %v1417_v2, %v457_v34  ;;  %v363_v37 = vpop.permute.xlu1 %362 }
  0xa7   : > { %v424_v38 = vmul.f32 %v1412_v1, %v363_v37  ;;  %1080 = vmatmul.mubr.f32.gmra.mrb[2].mxu0 %v560_v35  ;;  %v545_v39 = vadd.f32 %v1426_v9, %v523_v33 }
  0xa9   : > { %v524_v40 = vadd.f32 %v508_v36, %v424_v38  ;;  %v461_v41 = vpop.permute.xlu0 %460  ;;  %v561_v42 = vmax.f32 %v545_v39, 0.0 }
  0xaa   : > { %v509_v43 = vmul.f32 %v1417_v2, %v461_v41  ;;  %v368_v44 = vpop.permute.xlu1 %367 }
  0xab   : > { %v425_v45 = vmul.f32 %v1412_v1, %v368_v44  ;;  %1082 = vmatprep.mubr.f32.mxu0 %v561_v42  ;;  %v546_v46 = vadd.f32 %v1426_v9, %v524_v40 }
  0xad   : > { %v525_v47 = vadd.f32 %v509_v43, %v425_v45  ;;  %v465_v48 = vpop.permute.xlu0 %464  ;;  %v562_v49 = vmax.f32 %v546_v46, 0.0 }
  0xae   : > { %v510_v50 = vmul.f32 %v1417_v2, %v465_v48  ;;  %v373_v51 = vpop.permute.xlu1 %372 }
  0xaf   : > { %v426_v52 = vmul.f32 %v1412_v1, %v373_v51  ;;  %1083 = vmatmul.mubr.f32.gmra.mrb[4].mxu0 %v562_v49  ;;  %v547_v53 = vadd.f32 %v1426_v9, %v525_v47 }
  0xb1   : > { %v526_v54 = vadd.f32 %v510_v50, %v426_v52  ;;  %v469_v55 = vpop.permute.xlu0 %468  ;;  %v563_v56 = vmax.f32 %v547_v53, 0.0  ;;  %v316_v53 = vld [vmem:[%s1531_s5 + $0x70] sm:$0xff] }
  0xb2   : > { %v511_v57 = vmul.f32 %v1417_v2, %v469_v55  ;;  %v378_v58 = vpop.permute.xlu1 %377 }
  0xb3   : > { %v427_v59 = vmul.f32 %v1412_v1, %v378_v58  ;;  %1085 = vmatprep.mubr.f32.mxu0 %v563_v56  ;;  %v548_v60 = vadd.f32 %v1426_v9, %v526_v54 }
  0xb5   : > { %v527_v61 = vadd.f32 %v511_v57, %v427_v59  ;;  %v473_v62 = vpop.permute.xlu0 %472  ;;  %v564_v63 = vmax.f32 %v548_v60, 0.0 }
  0xb6   : > { %v512_v0 = vmul.f32 %v1417_v2, %v473_v62  ;;  %v383_v3 = vpop.permute.xlu1 %382 }
  0xb7   : > { %v428_v4 = vmul.f32 %v1412_v1, %v383_v3  ;;  %1086 = vmatmul.mubr.f32.gmra.mrb[6].mxu0 %v564_v63  ;;  %v549_v5 = vadd.f32 %v1426_v9, %v527_v61 }
  0xb9   : > { %v528_v6 = vadd.f32 %v512_v0, %v428_v4  ;;  %v477_v7 = vpop.permute.xlu0 %476  ;;  %v565_v8 = vmax.f32 %v549_v5, 0.0 }
  0xba   : > { %v513_v10 = vmul.f32 %v1417_v2, %v477_v7  ;;  %v388_v11 = vpop.permute.xlu1 %387 }
  0xbb   : > { %v429_v12 = vmul.f32 %v1412_v1, %v388_v11  ;;  %1088 = vmatprep.mubr.f32.mxu0 %v565_v8  ;;  %v550_v13 = vadd.f32 %v1426_v9, %v528_v6 }
  0xbd   : > { %v529_v14 = vadd.f32 %v513_v10, %v429_v12  ;;  %v481_v15 = vpop.permute.xlu0 %480  ;;  %v566_v16 = vmax.f32 %v550_v13, 0.0 }
  0xbe   : > { %v514_v17 = vmul.f32 %v1417_v2, %v481_v15  ;;  %v393_v18 = vpop.permute.xlu1 %392 }
  0xbf   : > { %v430_v19 = vmul.f32 %v1412_v1, %v393_v18  ;;  %1089 = vmatmul.mubr.f32.gmra.mrb[8].mxu0 %v566_v16  ;;  %v551_v20 = vadd.f32 %v1426_v9, %v529_v14 }
  0xc1   : > { %v530_v21 = vadd.f32 %v514_v17, %v430_v19  ;;  %v485_v22 = vpop.permute.xlu0 %484  ;;  %v567_v23 = vmax.f32 %v551_v20, 0.0 }
  0xc2   : > { %v515_v24 = vmul.f32 %v1417_v2, %v485_v22  ;;  %v398_v25 = vpop.permute.xlu1 %397 }
  0xc3   : > { %v431_v26 = vmul.f32 %v1412_v1, %v398_v25  ;;  %1091 = vmatprep.mubr.f32.mxu0 %v567_v23  ;;  %v552_v27 = vadd.f32 %v1426_v9, %v530_v21 }
  0xc5   : > { %v531_v28 = vadd.f32 %v515_v24, %v431_v26  ;;  %v489_v29 = vpop.permute.xlu0 %488  ;;  %v568_v30 = vmax.f32 %v552_v27, 0.0 }
  0xc6   : > { %v516_v31 = vmul.f32 %v1417_v2, %v489_v29  ;;  %v403_v32 = vpop.permute.xlu1 %402 }
  0xc7   : > { %v432_v33 = vmul.f32 %v1412_v1, %v403_v32  ;;  %1092 = vmatmul.mubr.f32.gmra.mrb[10].mxu0 %v568_v30  ;;  %v553_v34 = vadd.f32 %v1426_v9, %v531_v28 }
  0xc9   : > { %v532_v35 = vadd.f32 %v516_v31, %v432_v33  ;;  %v493_v36 = vpop.permute.xlu0 %492  ;;  %v569_v37 = vmax.f32 %v553_v34, 0.0 }
  0xca   : > { %v517_v38 = vmul.f32 %v1417_v2, %v493_v36  ;;  %v408_v39 = vpop.permute.xlu1 %407 }
  0xcb   : > { %v433_v40 = vmul.f32 %v1412_v1, %v408_v39  ;;  %1094 = vmatprep.mubr.f32.mxu0 %v569_v37  ;;  %v554_v41 = vadd.f32 %v1426_v9, %v532_v35 }
  0xcd   : > { %v533_v42 = vadd.f32 %v517_v38, %v433_v40  ;;  %v497_v43 = vpop.permute.xlu0 %496  ;;  %v570_v44 = vmax.f32 %v554_v41, 0.0  ;;  %v977_v41 = vld [vmem:[%s1532_s6] ss:$0 sm:$0xff] }
  0xce   : > { %v518_v45 = vmul.f32 %v1417_v2, %v497_v43  ;;  %v413_v46 = vpop.permute.xlu1 %412  ;;  %v317_v2 = vld [vmem:[%s1531_s5 + $0x78] sm:$0xff] }
  0xcf   : > { %v434_v47 = vmul.f32 %v1412_v1, %v413_v46  ;;  %1095 = vmatmul.mubr.f32.gmra.mrb[12].mxu0 %v570_v44  ;;  %v555_v48 = vadd.f32 %v1426_v9, %v533_v42  ;;  %v1216_v54 = vpack.c.bf16 %v317_v2, %v316_v53  ;;  %v976_v1 = vld [vmem:[%s1530_s4] ss:$0 sm:$0xff] }
  0xd1   : > { %v534_v49 = vadd.f32 %v518_v45, %v434_v47  ;;  %v571_v50 = vmax.f32 %v555_v48, 0.0  ;;  %1217 = vmatprep.subr.bf16.mxu1 %v1216_v54 }
  0xd2   : > { %1219 = vmatpush3.bf16.msra.mxu1 %v1216_v54 }
  0xd3   : > { %1097 = vmatprep.mubr.f32.mxu0 %v571_v50  ;;  %v556_v51 = vadd.f32 %v1426_v9, %v534_v49 }
  0xd5   : > { %v572_v52 = vmax.f32 %v556_v51, 0.0 }
  0xd7   : > { %1098 = vmatmul.mubr.f32.gmra.mrb[14].mxu0 %v572_v52 }
 0x172   : > { %v1078_v55 = vpop.f32.mrb[0].mxu0 }
 0x173   : > { %v651_v56 = vadd.f32 %v1078_v55, %v976_v1  ;;  %v645_v9 = vpop.f32.mrb[1].mxu0 }
 0x174   : > { %v646_v57 = vadd.f32 %v976_v1, %v645_v9 }
 0x175   : > { %v725_v59 = vmax.f32 %v651_v56, 0.0 }
 0x176   : > { %v724_v58 = vmax.f32 %v646_v57, 0.0 }
 0x178   : > { %1132 = vmatprep.mubr.f32.mxu1 %v724_v58 }
 0x179   : > { %1133 = vmatmul.mubr.f32.vlgmr.msra.gmra.mrb[0].mxu1 %v725_v59 }
 0x17a   : > { %v1081_v60 = vpop.f32.mrb[2].mxu0 }
 0x17b   : > { %v661_v61 = vadd.f32 %v1081_v60, %v976_v1  ;;  %v655_v62 = vpop.f32.mrb[3].mxu0 }
 0x17c   : > { %v656_v63 = vadd.f32 %v976_v1, %v655_v62 }
 0x17d   : > { %v727_v3 = vmax.f32 %v661_v61, 0.0 }
 0x17e   : > { %v726_v0 = vmax.f32 %v656_v63, 0.0 }
 0x180   : > { %1135 = vmatprep.mubr.f32.mxu1 %v726_v0 }
 0x181   : > { %1136 = vmatmul.mubr.f32.gmra.mrb[2].mxu1 %v727_v3 }
 0x182   : > { %v1084_v4 = vpop.f32.mrb[4].mxu0 }
 0x183   : > { %v671_v5 = vadd.f32 %v1084_v4, %v976_v1  ;;  %v665_v6 = vpop.f32.mrb[5].mxu0 }
 0x184   : > { %v666_v7 = vadd.f32 %v976_v1, %v665_v6 }
 0x185   : > { %v729_v10 = vmax.f32 %v671_v5, 0.0 }
 0x186   : > { %v728_v8 = vmax.f32 %v666_v7, 0.0 }
 0x188   : > { %1138 = vmatprep.mubr.f32.mxu1 %v728_v8 }
 0x189   : > { %1139 = vmatmul.mubr.f32.gmra.mrb[4].mxu1 %v729_v10 }
 0x18a   : > { %v1087_v11 = vpop.f32.mrb[6].mxu0 }
 0x18b   : > { %v681_v12 = vadd.f32 %v1087_v11, %v976_v1  ;;  %v675_v13 = vpop.f32.mrb[7].mxu0 }
 0x18c   : > { %v676_v14 = vadd.f32 %v976_v1, %v675_v13 }
 0x18d   : > { %v731_v16 = vmax.f32 %v681_v12, 0.0 }
 0x18e   : > { %v730_v15 = vmax.f32 %v676_v14, 0.0 }
 0x190   : > { %1141 = vmatprep.mubr.f32.mxu1 %v730_v15 }
 0x191   : > { %1142 = vmatmul.mubr.f32.gmra.mrb[6].mxu1 %v731_v16 }
 0x192   : > { %v1090_v17 = vpop.f32.mrb[8].mxu0 }
 0x193   : > { %v691_v18 = vadd.f32 %v1090_v17, %v976_v1  ;;  %v685_v19 = vpop.f32.mrb[9].mxu0 }
 0x194   : > { %v686_v20 = vadd.f32 %v976_v1, %v685_v19 }
 0x195   : > { %v733_v22 = vmax.f32 %v691_v18, 0.0 }
 0x196   : > { %v732_v21 = vmax.f32 %v686_v20, 0.0 }
 0x198   : > { %1144 = vmatprep.mubr.f32.mxu1 %v732_v21 }
 0x199   : > { %1145 = vmatmul.mubr.f32.gmra.mrb[8].mxu1 %v733_v22 }
 0x19a   : > { %v1093_v23 = vpop.f32.mrb[10].mxu0 }
 0x19b   : > { %v701_v24 = vadd.f32 %v1093_v23, %v976_v1  ;;  %v695_v25 = vpop.f32.mrb[11].mxu0 }
 0x19c   : > { %v696_v26 = vadd.f32 %v976_v1, %v695_v25 }
 0x19d   : > { %v735_v28 = vmax.f32 %v701_v24, 0.0 }
 0x19e   : > { %v734_v27 = vmax.f32 %v696_v26, 0.0 }
 0x1a0   : > { %1147 = vmatprep.mubr.f32.mxu1 %v734_v27 }
 0x1a1   : > { %1148 = vmatmul.mubr.f32.gmra.mrb[10].mxu1 %v735_v28 }
 0x1a2   : > { %v1096_v29 = vpop.f32.mrb[12].mxu0 }
 0x1a3   : > { %v711_v30 = vadd.f32 %v1096_v29, %v976_v1  ;;  %v705_v31 = vpop.f32.mrb[13].mxu0 }
 0x1a4   : > { %v706_v32 = vadd.f32 %v976_v1, %v705_v31 }
 0x1a5   : > { %v737_v34 = vmax.f32 %v711_v30, 0.0 }
 0x1a6   : > { %v736_v33 = vmax.f32 %v706_v32, 0.0 }
 0x1a8   : > { %1150 = vmatprep.mubr.f32.mxu1 %v736_v33 }
 0x1a9   : > { %1151 = vmatmul.mubr.f32.gmra.mrb[12].mxu1 %v737_v34 }
 0x1aa   : > { %v1099_v35 = vpop.f32.mrb[14].mxu0 }
 0x1ab   : > { %v721_v36 = vadd.f32 %v1099_v35, %v976_v1  ;;  %v715_v37 = vpop.f32.mrb[15].mxu0 }
 0x1ac   : > { %v716_v38 = vadd.f32 %v976_v1, %v715_v37 }
 0x1ad   : > { %v739_v40 = vmax.f32 %v721_v36, 0.0 }
 0x1ae   : > { %v738_v39 = vmax.f32 %v716_v38, 0.0 }
 0x1b0   : > { %1153 = vmatprep.mubr.f32.mxu1 %v738_v39 }
 0x1b1   : > { %1154 = vmatmul.mubr.f32.gmra.mrb[14].mxu1 %v739_v40 }
 0x24c   : > { %v1134_v42 = vpop.f32.mrb[0].mxu1 }
 0x24d   : > { %v818_v43 = vadd.f32 %v1134_v42, %v977_v41  ;;  %v812_v44 = vpop.f32.mrb[1].mxu1 }
 0x24e   : > { %v813_v45 = vadd.f32 %v977_v41, %v812_v44 }
 0x24f   : > { %893 = vst.msk [vmem:[%s1489_s27 + $0x8] sm:$0xff] %vm891_vm0, %v818_v43 }
 0x250   : > { %892 = vst.msk [vmem:[%s1489_s27] sm:$0xff] %vm891_vm0, %v813_v45 }
 0x254   : > { %v1137_v46 = vpop.f32.mrb[2].mxu1 }
 0x255   : > { %v828_v47 = vadd.f32 %v1137_v46, %v977_v41  ;;  %v822_v48 = vpop.f32.mrb[3].mxu1 }
 0x256   : > { %v823_v49 = vadd.f32 %v977_v41, %v822_v48 }
 0x257   : > { %895 = vst.msk [vmem:[%s1489_s27 + $0x18] sm:$0xff] %vm891_vm0, %v828_v47 }
 0x258   : > { %894 = vst.msk [vmem:[%s1489_s27 + $0x10] sm:$0xff] %vm891_vm0, %v823_v49 }
 0x25c   : > { %v1140_v50 = vpop.f32.mrb[4].mxu1 }
 0x25d   : > { %v838_v51 = vadd.f32 %v1140_v50, %v977_v41  ;;  %v832_v52 = vpop.f32.mrb[5].mxu1 }
 0x25e   : > { %v833_v53 = vadd.f32 %v977_v41, %v832_v52 }
 0x25f   : > { %897 = vst.msk [vmem:[%s1489_s27 + $0x28] sm:$0xff] %vm891_vm0, %v838_v51 }
 0x260   : > { %896 = vst.msk [vmem:[%s1489_s27 + $0x20] sm:$0xff] %vm891_vm0, %v833_v53 }
 0x264   : > { %v1143_v2 = vpop.f32.mrb[6].mxu1 }
 0x265   : > { %v848_v54 = vadd.f32 %v1143_v2, %v977_v41  ;;  %v842_v1 = vpop.f32.mrb[7].mxu1 }
 0x266   : > { %v843_v55 = vadd.f32 %v977_v41, %v842_v1 }
 0x267   : > { %899 = vst.msk [vmem:[%s1489_s27 + $0x38] sm:$0xff] %vm891_vm0, %v848_v54 }
 0x268   : > { %898 = vst.msk [vmem:[%s1489_s27 + $0x30] sm:$0xff] %vm891_vm0, %v843_v55 }
 0x26c   : > { %v1146_v56 = vpop.f32.mrb[8].mxu1 }
 0x26d   : > { %v858_v9 = vadd.f32 %v1146_v56, %v977_v41  ;;  %v852_v57 = vpop.f32.mrb[9].mxu1 }
 0x26e   : > { %v853_v58 = vadd.f32 %v977_v41, %v852_v57 }
 0x26f   : > { %901 = vst.msk [vmem:[%s1489_s27 + $0x48] sm:$0xff] %vm891_vm0, %v858_v9 }
 0x270   : > { %900 = vst.msk [vmem:[%s1489_s27 + $0x40] sm:$0xff] %vm891_vm0, %v853_v58 }
 0x274   : > { %v1149_v59 = vpop.f32.mrb[10].mxu1 }
 0x275   : > { %v868_v60 = vadd.f32 %v1149_v59, %v977_v41  ;;  %v862_v61 = vpop.f32.mrb[11].mxu1 }
 0x276   : > { %v863_v62 = vadd.f32 %v977_v41, %v862_v61 }
 0x277   : > { %903 = vst.msk [vmem:[%s1489_s27 + $0x58] sm:$0xff] %vm891_vm0, %v868_v60 }
 0x278   : > { %902 = vst.msk [vmem:[%s1489_s27 + $0x50] sm:$0xff] %vm891_vm0, %v863_v62 }
 0x27c   : > { %v1152_v63 = vpop.f32.mrb[12].mxu1 }
 0x27d   : > { %v878_v0 = vadd.f32 %v1152_v63, %v977_v41  ;;  %v872_v3 = vpop.f32.mrb[13].mxu1 }
 0x27e   : > { %v873_v4 = vadd.f32 %v977_v41, %v872_v3 }
 0x27f   : > { %905 = vst.msk [vmem:[%s1489_s27 + $0x68] sm:$0xff] %vm891_vm0, %v878_v0 }
 0x280   : > { %904 = vst.msk [vmem:[%s1489_s27 + $0x60] sm:$0xff] %vm891_vm0, %v873_v4 }
 0x284   : > { %v1155_v5 = vpop.f32.mrb[14].mxu1 }
 0x285   : > { %v888_v6 = vadd.f32 %v1155_v5, %v977_v41  ;;  %v882_v7 = vpop.f32.mrb[15].mxu1 }
 0x286   : > { %v883_v8 = vadd.f32 %v977_v41, %v882_v7 }
 0x287   : > { %907 = vst.msk [vmem:[%s1489_s27 + $0x78] sm:$0xff] %vm891_vm0, %v888_v6 }
 0x288   : > { %906 = vst.msk [vmem:[%s1489_s27 + $0x70] sm:$0xff] %vm891_vm0, %v883_v8 }
 0x289 PF: > { %s17_s24 = sadd.s32 1, %s1241_s24  }
 0x28a   : > { %p14_p4 = scmp.ge.s32.totalorder %s17_s24, 4  }
 0x28c   :  { %16 = sbr.rel (!%p14_p4) target bundleno = 1 (0x1), region = 78 }

</bundles_post_ra>
